<compile_context>
chip_gen: v7x
topology: tpu7x:2x2x1
jax: 0.10.0
libtpu: 0.0.40
codegen_flags: <defaults>
</compile_context>

<pallas_src>
import functools

import jax
import jax.numpy as jnp
from jax.experimental import pallas as pl
from jax.experimental.pallas import tpu as pltpu

LANE = 128
SUBLANE = 8


def _round_up(x, m):
    return ((x + m - 1) // m) * m


def _choose_tiling(batch, block_b, min_split_rows=256):
    """Pick a sublane-aligned batch tile.

    Avoids padding the batch all the way up to a tile multiple (tile shrinks to
    fit instead), and forces >=2 grid steps when there is enough work so that
    v7x's two TensorCores both get a share of the 'parallel' batch axis.
    """
    b8 = _round_up(max(batch, SUBLANE), SUBLANE)
    num_tiles = pl.cdiv(b8, block_b)
    if num_tiles == 1 and b8 >= min_split_rows:
        num_tiles = 2
    tm = _round_up(pl.cdiv(b8, num_tiles), SUBLANE)
    rows = num_tiles * tm
    return tm, rows, num_tiles


def _task_classifier_kernel(x_ref, wt_ref, b_ref, out_ref):
    """logits = x @ W^T + b for one batch tile (single shared head).

    x_ref  : (tm, D)     bf16 features (batch tile)
    wt_ref : (D, Cpad)   bf16 pre-transposed, zero-padded weight (resident)
    b_ref  : (1, Cpad)   f32 zero-padded bias (resident)
    out_ref: (tm, Cpad)  f32 logits (lane-dense -> unmasked vst)
    """
    logits = jnp.dot(x_ref[...], wt_ref[...], preferred_element_type=jnp.float32)
    out_ref[...] = (logits + b_ref[...]).astype(out_ref.dtype)


@functools.partial(jax.jit, static_argnames=("num_classes", "block_b"))
def classifier_pred(x, wt_pad, b_pad, *, num_classes, block_b=1024):
    """Shared task-classifier head for one source domain.  Returns (B, C) logits."""
    B, D = x.shape
    Cpad = wt_pad.shape[1]
    tm, rows, num_tiles = _choose_tiling(B, block_b)

    # Halve the dominant HBM read stream: features travel as bf16; the MXU
    # accumulates in f32 via preferred_element_type in the kernel.
    x = x.astype(jnp.bfloat16)
    if rows != B:
        x = jnp.pad(x, ((0, rows - B), (0, 0)))

    bytes_accessed = (rows * D * 2          # x (bf16)
                      + D * Cpad * 2        # weight (bf16, resident)
                      + Cpad * 4            # bias (f32, resident)
                      + rows * Cpad * 4)    # logits (f32)

    grid_spec = pltpu.PrefetchScalarGridSpec(
        num_scalar_prefetch=0,
        grid=(num_tiles,),
        in_specs=[
            pl.BlockSpec((tm, D), lambda i: (i, 0)),     # batch-tiled features
            pl.BlockSpec((D, Cpad), lambda i: (0, 0)),   # resident weight (constant index -> no re-DMA)
            pl.BlockSpec((1, Cpad), lambda i: (0, 0)),   # resident bias
        ],
        out_specs=pl.BlockSpec((tm, Cpad), lambda i: (i, 0)),
    )

    out_pad = pl.pallas_call(
        _task_classifier_kernel,
        out_shape=jax.ShapeDtypeStruct((rows, Cpad), jnp.float32),
        grid_spec=grid_spec,
        compiler_params=pltpu.CompilerParams(
            dimension_semantics=("parallel",),   # megacore sharding on v7x
        ),
        cost_estimate=pl.CostEstimate(
            flops=2 * rows * D * Cpad,
            transcendentals=0,
            bytes_accessed=bytes_accessed,
        ),
    )(x, wt_pad, b_pad)

    # Single fused slice: drop batch padding and class padding in one copy.
    return out_pad[:B, :num_classes]


class M3SDAModelPallas:
    """Pallas re-implementation of M3SDA_model.forward (feature_extractor_input=True path)."""

    def __init__(self, feature_dim, num_classes, num_src_domains, key):
        self.num_src_domains = num_src_domains
        self.num_classes = num_classes
        self.feature_dim = feature_dim

        # torch.nn.Linear default init: U(-1/sqrt(fan_in), 1/sqrt(fan_in))
        bound = 1.0 / float(feature_dim) ** 0.5
        kw, kb = jax.random.split(key)
        w = jax.random.uniform(kw, (num_classes, feature_dim), jnp.float32, -bound, bound)
        b = jax.random.uniform(kb, (num_classes,), jnp.float32, -bound, bound)

        # PyTorch-layout params kept for reference checks.
        self.weight = w          # (C, D)  f32
        self.bias = b            # (C,)    f32

        # Host-side prep: transpose once, zero-pad class dim to a lane multiple,
        # and store the weight as bf16 (MXU-native, f32 accumulate in-kernel).
        c_pad = _round_up(num_classes, LANE)
        wt_pad = jnp.zeros((feature_dim, c_pad), jnp.float32)
        wt_pad = wt_pad.at[:, :num_classes].set(w.T)
        self.wt_pad = wt_pad.astype(jnp.bfloat16)          # (D, Cpad) bf16
        b_pad = jnp.zeros((1, c_pad), jnp.float32)
        self.b_pad = b_pad.at[0, :num_classes].set(b)       # (1, Cpad) f32

        # Reference reuses the SAME nn.Linear instance for every (domain, head).
        self.task_classifiers = [
            [(self.wt_pad, self.b_pad), (self.wt_pad, self.b_pad)]
            for _ in range(num_src_domains)
        ]

    def forward(self, input_data, index=None, feature_extractor_input=False,
                output_only_features=False, reverse=False, alpha=1.0):
        if not feature_extractor_input:
            raise NotImplementedError(
                "BERT + external feature_extractor path is not part of the synthetic kernel.")
        feature_extractor_output = input_data
        if output_only_features:
            return feature_extractor_output
        if reverse:
            # ReverseLayerF.forward(x, alpha) == x (gradient reversal is backward-only).
            pass
        wt_pad, b_pad = self.task_classifiers[index][0]
        pred = classifier_pred(feature_extractor_output, wt_pad, b_pad,
                               num_classes=self.num_classes)
        # Both heads are the same nn.Linear instance in the reference -> the
        # outputs are bit-identical; return the single kernel result twice
        # (halves output HBM writeback vs. computing/storing it twice).
        return pred, pred


if __name__ == "__main__":
    B, D, C = 8, 32, 4          # batch, feature dim, num classes
    NUM_SRC_DOMAINS = 3

    key = jax.random.PRNGKey(0)
    k_feat, k_params = jax.random.split(key)

    # Synthetic "feature_extractor_output" (feature_extractor_input=True path).
    features = jax.random.normal(k_feat, (B, D), jnp.float32)

    model = M3SDAModelPallas(D, C, NUM_SRC_DOMAINS, k_params)

    # Exercise output_only_features and reverse flags too.
    feats_only = model.forward(features, feature_extractor_input=True,
                               output_only_features=True)
    pred1, pred2 = model.forward(features, index=1, feature_extractor_input=True,
                                 reverse=True, alpha=0.5)
    pred1 = jax.block_until_ready(pred1)
    pred2 = jax.block_until_ready(pred2)
    feats_only = jax.block_until_ready(feats_only)

    assert pred1.shape == (B, C) and pred2.shape == (B, C)

    # Reference check: same bf16-rounded operands, f32 accumulate (MXU semantics).
    x_bf = features.astype(jnp.bfloat16).astype(jnp.float32)
    w_bf = model.weight.astype(jnp.bfloat16).astype(jnp.float32)
    ref_bf = x_bf @ w_bf.T + model.bias[None, :]
    assert jnp.allclose(pred1, ref_bf, atol=1e-4)
    assert jnp.allclose(pred2, ref_bf, atol=1e-4)   # shared module -> identical heads

    # Loose check against the pure-f32 PyTorch nn.Linear reference (bf16 input cast).
    ref_f32 = features @ model.weight.T + model.bias[None, :]
    assert jnp.allclose(pred1, ref_f32, atol=2e-2)

    assert jnp.allclose(feats_only, features)

    print("KERNEL_OK")
</pallas_src>

<mosaic_0001>
module attributes {stable_mosaic.version = 11 : i64} {
  func.func @_task_classifier_kernel(%arg0: i32, %arg1: memref<8x32xbf16, #tpu.memory_space<vmem>>, %arg2: memref<32x128xbf16, #tpu.memory_space<vmem>>, %arg3: memref<1x128xf32, #tpu.memory_space<vmem>>, %arg4: memref<8x128xf32, #tpu.memory_space<vmem>>) attributes {dimension_semantics = [#tpu.dimension_semantics<parallel>], iteration_bounds = array<i64: 1>, scalar_prefetch = 0 : i64, scratch_operands = 0 : i64, tpu.core_type = #tpu.core_type<tc>, window_params = [{transform_indices = @transform_0, window_bounds = array<i64: 8, 32>}, {pipeline_mode = #tpu.pipeline_mode<synchronous>, transform_indices = @transform_1, window_bounds = array<i64: 32, 128>}, {pipeline_mode = #tpu.pipeline_mode<synchronous>, transform_indices = @transform_2, window_bounds = array<i64: 1, 128>}, {transform_indices = @transform_3, window_bounds = array<i64: 8, 128>}]} {
    %c0 = arith.constant 0 : index
    %c0_0 = arith.constant 0 : index
    %0 = vector.load %arg1[%c0, %c0_0] : memref<8x32xbf16, #tpu.memory_space<vmem>>, vector<8x32xbf16>
    %c0_1 = arith.constant 0 : index
    %c0_2 = arith.constant 0 : index
    %1 = vector.load %arg2[%c0_1, %c0_2] : memref<32x128xbf16, #tpu.memory_space<vmem>>, vector<32x128xbf16>
    %cst = arith.constant dense<0.000000e+00> : vector<8x128xf32>
    %2 = tpu.matmul %0, %1, %cst {dimension_numbers = #tpu.dot_dimension_numbers<[1], [0], [0], [1], [0, 0, 1, 1], [], []>} : vector<8x32xbf16>, vector<32x128xbf16>, vector<8x128xf32> -> vector<8x128xf32>
    %c0_3 = arith.constant 0 : index
    %c0_4 = arith.constant 0 : index
    %3 = vector.load %arg3[%c0_3, %c0_4] : memref<1x128xf32, #tpu.memory_space<vmem>>, vector<1x128xf32>
    %4 = vector.broadcast %3 : vector<1x128xf32> to vector<8x128xf32>
    %5 = arith.addf %2, %4 : vector<8x128xf32>
    %c0_5 = arith.constant 0 : index
    %c0_6 = arith.constant 0 : index
    %6 = vector.load %arg4[%c0_5, %c0_6] : memref<8x128xf32, #tpu.memory_space<vmem>>, vector<8x128xf32>
    tpu.vector_store %arg4[%c0_5, %c0_6], %5 {strides = array<i32>} : memref<8x128xf32, #tpu.memory_space<vmem>>, vector<8x128xf32>,
    return
  }
  func.func @transform_0(%arg0: i32) -> (i32, i32) {
    %c0_i32 = arith.constant 0 : i32
    %c0_i32_0 = arith.constant 0 : i32
    return %arg0, %c0_i32 : i32, i32
  }
  func.func @transform_1(%arg0: i32) -> (i32, i32) {
    %c0_i32 = arith.constant 0 : i32
    %c0_i32_0 = arith.constant 0 : i32
    %c0_i32_1 = arith.constant 0 : i32
    return %c0_i32, %c0_i32_0 : i32, i32
  }
  func.func @transform_2(%arg0: i32) -> (i32, i32) {
    %c0_i32 = arith.constant 0 : i32
    %c0_i32_0 = arith.constant 0 : i32
    %c0_i32_1 = arith.constant 0 : i32
    return %c0_i32, %c0_i32_0 : i32, i32
  }
  func.func @transform_3(%arg0: i32) -> (i32, i32) {
    %c0_i32 = arith.constant 0 : i32
    %c0_i32_0 = arith.constant 0 : i32
    return %arg0, %c0_i32 : i32, i32
  }
}

</mosaic_0001>

<bundles_post_ra>
// kernel: classifier_pred.1
= control target key start
LH: loop header
LB: loop body
LE: loop exit
PB: predicated region body
PF: predicated region fallthrough
CT: control target
= control target key end

     0   :  { %8 = vsyncpa [#allocation3], 0  ;;  %s149_s12 = smov [#allocation2]   ;;  %s195_s0 = inlined_call_operand.vmem [shape: bf16[8,32], index: 0, kind: input, shape index: {}]   ;;  %s196_s1 = inlined_call_operand.hbm [shape: bf16[32,128], index: 1, kind: input, shape index: {}]   ;;  %s197_s2 = inlined_call_operand.vmem [shape: f32[1,128], index: 2, kind: input, shape index: {}]   ;;  %s198_s3 = inlined_call_operand.vmem [shape: f32[8,128], index: 3, kind: output, shape index: {}]  }
   0x1   :  { %s16_s13 = sshll.u32 %s149_s12, 4  ;;  %s125_s16 = scalar_lea.hbm %s196_s1, 256  ;;  %s17_s13 = int_to_ptr.vmem [resolvable:$true] %s16_s13 }
   0x2   :  { %p126_p0 = scmp.ne.s32.totalorder %s196_s1, %s125_s16  ;;  %p129_p1 = scmp.lt.u32.totalorder %s125_s16, %s196_s1 }
   0x4   :  { %p131_p2 = pnand %p129_p1, %p126_p0 }
   0x6   :  { %134 = shalt.err (!%p131_p2)
}
   0x7   :  { %s135_s21 = scalar_lea.vmem %s17_s13, 256  ;;  %p140_p4 = scmp.lt.s32.totalorder %s17_s13, %s17_s13 }
   0x8   :  { %p136_p3 = scmp.ne.s32.totalorder %s17_s13, %s135_s21  ;;  %p141_p5 = scmp.lt.s32.totalorder %s135_s21, %s135_s21 }
   0xa   :  { %p142_p6 = por %p141_p5, %p140_p4 }
   0xc   :  { %p143_p7 = pnand %p142_p6, %p136_p3 }
   0xe   :  { %146 = shalt.err (!%p143_p7)
}
   0xf   :  { %s150_s22 = smov 64   ;;  %s151_s23 = smov 4  }
  0x10   :  { %22 = dma.hbm_to_vmem [thread:$0]  %s196_s1, 256, %s17_s13, [#allocation3], %s150_s22, %s150_s22, %s151_s23  }
  0x11   :  { %147 = dma.done.wait [#allocation3], 256  }
  0x12   :  { %148 = vsyncadd [#allocation3], 4294967040  ;;  %v152_v0 = vmov 0.0   ;;  %vm153_vm0 = vmmov 0   ;;  %v123_v1 = vld [vmem:[#allocation2] sm:$0xff]   ;;  %v124_v2 = vld [vmem:[#allocation2 + $0x8] sm:$0xff]  }
  0x13   :  { %110 = vmatprep.subr.bf16.mxu0 %v152_v0  ;;  %114 = vmatprep.mubr.msk.bf16.mxu0 %vm153_vm0, %v152_v0  ;;  %v29_v3 = vld [vmem:[%s195_s0] sm:$0xf]  ;;  %vm53_vm1 = vcmask 261120  }
  0x14   :  { %111 = vmatpush3.bf16.msra.mxu0 %v123_v1  ;;  %v103_v4 = vld [vmem:[%s197_s2] ss:$0 sm:$0xff] }
  0x15   :  { %112 = vmatprep.subr.bf16.mxu0 %v152_v0 }
  0x18   :  { %113 = vmatpush3.bf16.msra.mxu0 %v124_v2 }
  0x1b   :  { %115 = vmatmul.mubr.msk.bf16.vlgmr.msra.gmra.mrb[0].mxu0 %vm53_vm1, %v29_v3 }
  0xee   :  { %v91_v5 = vpop.f32.mrb[0].mxu0 }
  0xef   :  { %v92_v6 = vadd.f32 %v103_v4, %v91_v5  ;;  %v116_v7 = vpop.f32.mrb[1].mxu0 }
  0xf0   :  { %v94_v8 = vpop.f32.mrb[2].mxu0 }
  0xf1   :  { %97 = vst [vmem:[%s198_s3] sm:$0xff] %v92_v6  ;;  %v117_v9 = vpop.f32.mrb[3].mxu0 }
  0xf2   :  { %102 = vsyncpa [#allocation3], 1 }

</bundles_post_ra>
